<compile_context>
chip_gen: v6e
topology: v6e:2x2x1
jax: 0.10.0
libtpu: 0.0.40
codegen_flags: <defaults>
</compile_context>

<pallas_src>
import functools

import jax
import jax.numpy as jnp
from jax.experimental import pallas as pl
from jax.experimental.pallas import tpu as pltpu


# ---------------------------------------------------------------------------
# Kernels
# ---------------------------------------------------------------------------

def _class_kl_kernel(x_ref, y_ref, o_ref):
    """Single pass over the full class axis (row slice fits in VMEM)."""
    x = x_ref[...].astype(jnp.float32)
    y = y_ref[...].astype(jnp.float32)

    m_x = jnp.max(x, axis=-1, keepdims=True)
    m_y = jnp.max(y, axis=-1, keepdims=True)
    x_shift = x - m_x
    y_shift = y - m_y
    x_exp = jnp.exp(x_shift)
    y_exp = jnp.exp(y_shift)
    s_x = jnp.sum(x_exp, axis=-1, keepdims=True)
    s_y = jnp.sum(y_exp, axis=-1, keepdims=True)

    # sum_j softmax(y)_j * (log softmax(y)_j - log softmax(x)_j)
    #   = sum_j y_exp_j*(y_shift_j - x_shift_j)/s_y + log(s_x) - log(s_y)
    # (the max_x / max_y terms cancel exactly).
    w = jnp.sum(y_exp * (y_shift - x_shift), axis=-1, keepdims=True)
    o_ref[...] = w / s_y + jnp.log(s_x) - jnp.log(s_y)


def _class_kl_kernel_chunked(x_ref, y_ref, o_ref,
                             mx_sc, my_sc, sx_sc, sy_sc, w_sc,
                             *, c_total, tile_c):
    """Large-C path: online (flash-style) accumulation across C chunks."""
    j = pl.program_id(1)

    @pl.when(j == 0)
    def _():
        mx_sc[...] = jnp.full_like(mx_sc, -jnp.inf)
        my_sc[...] = jnp.full_like(my_sc, -jnp.inf)
        sx_sc[...] = jnp.zeros_like(sx_sc)
        sy_sc[...] = jnp.zeros_like(sy_sc)
        w_sc[...] = jnp.zeros_like(w_sc)

    x = x_ref[...].astype(jnp.float32)
    y = y_ref[...].astype(jnp.float32)

    # Mask lanes past the true class count (the last chunk may overrun C).
    col = j * tile_c + jax.lax.broadcasted_iota(jnp.int32, x.shape, 1)
    valid = col < c_total
    neg_inf = jnp.float32(-jnp.inf)

    mx_new = jnp.maximum(
        mx_sc[...], jnp.max(jnp.where(valid, x, neg_inf), axis=-1, keepdims=True))
    my_new = jnp.maximum(
        my_sc[...], jnp.max(jnp.where(valid, y, neg_inf), axis=-1, keepdims=True))

    a_x = jnp.exp(mx_sc[...] - mx_new)   # rescale factors for the running sums
    a_y = jnp.exp(my_sc[...] - my_new)

    x_exp = jnp.where(valid, jnp.exp(x - mx_new), 0.0)
    y_exp = jnp.where(valid, jnp.exp(y - my_new), 0.0)

    sx_sc[...] = a_x * sx_sc[...] + jnp.sum(x_exp, axis=-1, keepdims=True)
    sy_sc[...] = a_y * sy_sc[...] + jnp.sum(y_exp, axis=-1, keepdims=True)
    # Running W = sum_j exp(y_j - m_y) * (y_j - x_j); raw (y - x) needs no shift.
    w_chunk = jnp.where(valid, y_exp * (y - x), 0.0)
    w_sc[...] = a_y * w_sc[...] + jnp.sum(w_chunk, axis=-1, keepdims=True)

    mx_sc[...] = mx_new
    my_sc[...] = my_new

    @pl.when(j == pl.num_programs(1) - 1)
    def _():
        # KL_row = W / s_y + logsumexp(x) - logsumexp(y)
        o_ref[...] = (w_sc[...] / sy_sc[...]
                      + (mx_sc[...] + jnp.log(sx_sc[...]))
                      - (my_sc[...] + jnp.log(sy_sc[...])))


# ---------------------------------------------------------------------------
# Tiling / VMEM planning
# ---------------------------------------------------------------------------

def _vmem_limit_bytes():
    """Per-generation VMEM budget: ~48 MiB on v7x (64 MiB/TC), 64 MiB elsewhere."""
    cap = None
    try:
        cap = getattr(pltpu.get_tpu_info(), "vmem_capacity_bytes", None)
    except Exception:
        cap = None
    if not cap:
        cap = 64 * 1024 * 1024            # conservative fallback: v7x per-TC size
    return int(min(0.75 * cap, 64 * 1024 * 1024))


def _sublane_multiple(itemsize):
    # Native sublane packing: f32 -> 8, bf16/f16 -> 16, int8/fp8 -> 32.
    return max(8, 32 // max(int(itemsize), 1))


def _tile_plan(n, c, itemsize, vmem_limit):
    """Returns (tile_n, tile_c); tile_c is None for the single-pass path."""
    sub = _sublane_multiple(itemsize)
    n_pad = ((n + sub - 1) // sub) * sub
    budget = int(0.8 * vmem_limit)
    # Per (row, full-C) slice: 2 inputs x 2 pipeline buffers in the input dtype
    # plus ~5 live tile-sized f32 intermediates inside the kernel body.
    bytes_per_row = c * (4 * itemsize + 5 * 4)

    t = budget // max(bytes_per_row, 1)
    t = min(t, 1024, n_pad)               # >=512-row tiles already ~HBM roofline
    t = (t // sub) * sub
    if t >= sub:
        return int(t), None

    # Even the minimum row tile over full C blows the budget: chunk the class axis.
    tile_n = min(n_pad, 256)
    tile_n = max(sub, (tile_n // sub) * sub)
    bytes_per_col = tile_n * (4 * itemsize + 5 * 4)
    tile_c = budget // max(bytes_per_col, 1)
    tile_c = max(128, (tile_c // 128) * 128)
    tile_c = min(tile_c, ((c + 127) // 128) * 128)
    return int(tile_n), int(tile_c)


# ---------------------------------------------------------------------------
# Wrapper
# ---------------------------------------------------------------------------

@functools.partial(jax.jit, static_argnames=("mode", "tile_n", "tile_c"))
def class_kl(inputs, labels, mode="mean", tile_n=None, tile_c=None):
    """Pallas implementation of ClassKL.forward for (N, C) logits."""
    assert inputs.shape == labels.shape and inputs.ndim == 2
    if mode not in ("mean", "sum"):
        raise ValueError(f"unknown mode: {mode}")

    n, c = inputs.shape
    itemsize = jnp.dtype(inputs.dtype).itemsize
    vmem_limit = _vmem_limit_bytes()
    auto_tn, auto_tc = _tile_plan(n, c, itemsize, vmem_limit)
    if tile_n is None:
        tile_n = auto_tn
    if tile_c is None:
        tile_c = auto_tc

    grid_rows = pl.cdiv(n, tile_n)
    out_shape = jax.ShapeDtypeStruct((n, 1), jnp.float32)

    if tile_c is None:
        per_row = pl.pallas_call(
            _class_kl_kernel,
            out_shape=out_shape,
            grid_spec=pltpu.PrefetchScalarGridSpec(
                num_scalar_prefetch=0,
                grid=(grid_rows,),
                in_specs=[
                    pl.BlockSpec((tile_n, c), lambda i: (i, 0)),
                    pl.BlockSpec((tile_n, c), lambda i: (i, 0)),
                ],
                out_specs=pl.BlockSpec((tile_n, 1), lambda i: (i, 0)),
            ),
            compiler_params=pltpu.CompilerParams(
                dimension_semantics=("parallel",),
                vmem_limit_bytes=vmem_limit,
            ),
        )(inputs, labels)
    else:
        grid_cols = pl.cdiv(c, tile_c)
        kernel = functools.partial(_class_kl_kernel_chunked,
                                   c_total=c, tile_c=tile_c)
        per_row = pl.pallas_call(
            kernel,
            out_shape=out_shape,
            grid_spec=pltpu.PrefetchScalarGridSpec(
                num_scalar_prefetch=0,
                grid=(grid_rows, grid_cols),
                in_specs=[
                    pl.BlockSpec((tile_n, tile_c), lambda i, j: (i, j)),
                    pl.BlockSpec((tile_n, tile_c), lambda i, j: (i, j)),
                ],
                out_specs=pl.BlockSpec((tile_n, 1), lambda i, j: (i, 0)),
                scratch_shapes=[pltpu.VMEM((tile_n, 1), jnp.float32)] * 5,
            ),
            compiler_params=pltpu.CompilerParams(
                dimension_semantics=("parallel", "arbitrary"),
                vmem_limit_bytes=vmem_limit,
            ),
        )(inputs, labels)

    per_row = per_row[:, 0]
    loss = jnp.sum(per_row)
    if mode == "mean":
        loss = loss / n
    return loss


# ---------------------------------------------------------------------------
# Reference & self-test
# ---------------------------------------------------------------------------

def _reference(inputs, labels, mode="mean"):
    x_sm = jax.nn.softmax(inputs.astype(jnp.float32), axis=1)
    y_sm = jax.nn.softmax(labels.astype(jnp.float32), axis=1)
    kl = y_sm * jnp.log(y_sm) - y_sm * jnp.log(x_sm)
    per_row = jnp.sum(kl, axis=1)
    return jnp.mean(per_row) if mode == "mean" else jnp.sum(per_row)


if __name__ == "__main__":
    key = jax.random.PRNGKey(0)

    # Single-pass path: divisible and ragged row counts, class axis on lanes.
    for (N, C) in [(32, 128), (30, 200)]:
        k1, k2 = jax.random.split(jax.random.fold_in(key, N * 1000 + C))
        inputs = jax.random.normal(k1, (N, C), dtype=jnp.float32)
        labels = jax.random.normal(k2, (N, C), dtype=jnp.float32)
        for mode in ("mean", "sum"):
            out = jax.block_until_ready(class_kl(inputs, labels, mode=mode))
            ref = _reference(inputs, labels, mode=mode)
            assert jnp.allclose(out, ref, rtol=2e-4, atol=1e-5), (N, C, mode, out, ref)

    # Large-C (chunked/online) path forced at a small shape: C=200 with
    # tile_c=128 exercises the masked tail chunk; N=30 the masked tail rows.
    k1, k2 = jax.random.split(jax.random.fold_in(key, 3))
    inputs = jax.random.normal(k1, (30, 200), dtype=jnp.float32)
    labels = jax.random.normal(k2, (30, 200), dtype=jnp.float32)
    for mode in ("mean", "sum"):
        out = jax.block_until_ready(
            class_kl(inputs, labels, mode=mode, tile_n=16, tile_c=128))
        ref = _reference(inputs, labels, mode=mode)
        assert jnp.allclose(out, ref, rtol=2e-4, atol=1e-5), (mode, out, ref)

    # bf16 logits stay bf16 through the DMA (halved HBM traffic); upcast in-kernel.
    k1, k2 = jax.random.split(jax.random.fold_in(key, 7))
    inputs = jax.random.normal(k1, (32, 128), dtype=jnp.bfloat16)
    labels = jax.random.normal(k2, (32, 128), dtype=jnp.bfloat16)
    out = jax.block_until_ready(class_kl(inputs, labels, mode="mean"))
    ref = _reference(inputs, labels, mode="mean")
    assert jnp.allclose(out, ref, rtol=2e-2, atol=1e-2), (out, ref)

    print("KERNEL_OK")
</pallas_src>

<mosaic_0001>
module attributes {stable_mosaic.version = 11 : i64} {
  func.func @_class_kl_kernel(%arg0: i32, %arg1: memref<32x128xf32, #tpu.memory_space<vmem>>, %arg2: memref<32x128xf32, #tpu.memory_space<vmem>>, %arg3: memref<32x1xf32, #tpu.memory_space<vmem>>) attributes {dimension_semantics = [#tpu.dimension_semantics<parallel>], iteration_bounds = array<i64: 1>, scalar_prefetch = 0 : i64, scratch_operands = 0 : i64, tpu.core_type = #tpu.core_type<tc>, window_params = [{transform_indices = @transform_0, window_bounds = array<i64: 32, 128>}, {transform_indices = @transform_1, window_bounds = array<i64: 32, 128>}, {transform_indices = @transform_2, window_bounds = array<i64: 32, 1>}]} {
    %c0 = arith.constant 0 : index
    %c0_0 = arith.constant 0 : index
    %0 = vector.load %arg1[%c0, %c0_0] : memref<32x128xf32, #tpu.memory_space<vmem>>, vector<32x128xf32>
    %c0_1 = arith.constant 0 : index
    %c0_2 = arith.constant 0 : index
    %1 = vector.load %arg2[%c0_1, %c0_2] : memref<32x128xf32, #tpu.memory_space<vmem>>, vector<32x128xf32>
    %cst = arith.constant dense<0xFF800000> : vector<32xf32>
    %2 = vector.multi_reduction <maximumf>, %0, %cst [1] : vector<32x128xf32> to vector<32xf32>
    %3 = vector.shape_cast %2 : vector<32xf32> to vector<32x1xf32>
    %cst_3 = arith.constant dense<0xFF800000> : vector<32xf32>
    %4 = vector.multi_reduction <maximumf>, %1, %cst_3 [1] : vector<32x128xf32> to vector<32xf32>
    %5 = vector.shape_cast %4 : vector<32xf32> to vector<32x1xf32>
    %6 = vector.broadcast %3 : vector<32x1xf32> to vector<32x128xf32>
    %7 = arith.subf %0, %6 : vector<32x128xf32>
    %8 = vector.broadcast %5 : vector<32x1xf32> to vector<32x128xf32>
    %9 = arith.subf %1, %8 : vector<32x128xf32>
    %10 = math.exp %7 : vector<32x128xf32>
    %11 = math.exp %9 : vector<32x128xf32>
    %cst_4 = arith.constant dense<0.000000e+00> : vector<32xf32>
    %12 = vector.multi_reduction <add>, %10, %cst_4 [1] : vector<32x128xf32> to vector<32xf32>
    %13 = vector.shape_cast %12 : vector<32xf32> to vector<32x1xf32>
    %cst_5 = arith.constant dense<0.000000e+00> : vector<32xf32>
    %14 = vector.multi_reduction <add>, %11, %cst_5 [1] : vector<32x128xf32> to vector<32xf32>
    %15 = vector.shape_cast %14 : vector<32xf32> to vector<32x1xf32>
    %16 = arith.subf %9, %7 : vector<32x128xf32>
    %17 = arith.mulf %11, %16 : vector<32x128xf32>
    %cst_6 = arith.constant dense<0.000000e+00> : vector<32xf32>
    %18 = vector.multi_reduction <add>, %17, %cst_6 [1] : vector<32x128xf32> to vector<32xf32>
    %19 = vector.shape_cast %18 : vector<32xf32> to vector<32x1xf32>
    %20 = arith.divf %19, %15 : vector<32x1xf32>
    %21 = math.log %13 : vector<32x1xf32>
    %22 = arith.addf %20, %21 : vector<32x1xf32>
    %23 = math.log %15 : vector<32x1xf32>
    %24 = arith.subf %22, %23 : vector<32x1xf32>
    %c0_7 = arith.constant 0 : index
    %c0_8 = arith.constant 0 : index
    %25 = vector.load %arg3[%c0_7, %c0_8] : memref<32x1xf32, #tpu.memory_space<vmem>>, vector<32x1xf32>
    tpu.vector_store %arg3[%c0_7, %c0_8], %24 {strides = array<i32>} : memref<32x1xf32, #tpu.memory_space<vmem>>, vector<32x1xf32>,
    return
  }
  func.func @transform_0(%arg0: i32) -> (i32, i32) {
    %c0_i32 = arith.constant 0 : i32
    %c0_i32_0 = arith.constant 0 : i32
    return %arg0, %c0_i32 : i32, i32
  }
  func.func @transform_1(%arg0: i32) -> (i32, i32) {
    %c0_i32 = arith.constant 0 : i32
    %c0_i32_0 = arith.constant 0 : i32
    return %arg0, %c0_i32 : i32, i32
  }
  func.func @transform_2(%arg0: i32) -> (i32, i32) {
    %c0_i32 = arith.constant 0 : i32
    %c0_i32_0 = arith.constant 0 : i32
    return %arg0, %c0_i32 : i32, i32
  }
}

</mosaic_0001>

<bundles_post_ra>
// kernel: class_kl.1
= control target key start
LH: loop header
LB: loop body
LE: loop exit
PB: predicated region body
PF: predicated region fallthrough
CT: control target
= control target key end

     0   :  { %7 = vsyncpa [#allocation3], 0  ;;  %s291_s0 = inlined_call_operand.hbm [shape: f32[32,128], index: 0, kind: input, shape index: {}]   ;;  %s292_s1 = inlined_call_operand.hbm [shape: f32[32,128], index: 1, kind: input, shape index: {}]   ;;  %s293_s2 = inlined_call_operand.vmem [shape: f32[32,1], index: 2, kind: output, shape index: {}]  }
   0x1   :  { %8 = vsyncpa [#allocation5], 0  ;;  %s250_s9 = smov [#allocation2]  }
   0x2   :  { %s14_s10 = sshll.u32 %s250_s9, 4  ;;  %s15_s10 = int_to_ptr.vmem [resolvable:$true] %s14_s10 }
   0x3   :  { %s214_s11 = scalar_lea.vmem %s15_s10, 512  ;;  %p219_p1 = scmp.lt.s32.totalorder %s15_s10, %s15_s10 }
   0x4   :  { %p215_p0 = scmp.ne.s32.totalorder %s15_s10, %s214_s11  ;;  %p220_p2 = scmp.lt.s32.totalorder %s214_s11, %s214_s11 }
   0x6   :  { %p221_p3 = por %p220_p2, %p219_p1 }
   0x8   :  { %p222_p4 = pnand %p221_p3, %p215_p0 }
   0xa   :  { %225 = shalt.err (!%p222_p4)
}
   0xb   :  { %s251_s12 = smov 128   ;;  %s252_s13 = smov 8  }
   0xc   :  { %20 = dma.hbm_to_vmem [thread:$0]  %s291_s0, 512, %s15_s10, [#allocation3], %s251_s12, %s251_s12, %s252_s13  }
   0xd   :  { %s253_s16 = smov [#allocation4]  }
   0xe   :  { %s26_s17 = sshll.u32 %s253_s16, 4  ;;  %s27_s17 = int_to_ptr.vmem [resolvable:$true] %s26_s17 }
   0xf   :  { %s234_s18 = scalar_lea.vmem %s27_s17, 512  ;;  %p239_p6 = scmp.lt.s32.totalorder %s27_s17, %s27_s17 }
  0x10   :  { %p235_p5 = scmp.ne.s32.totalorder %s27_s17, %s234_s18  ;;  %p240_p7 = scmp.lt.s32.totalorder %s234_s18, %s234_s18 }
  0x12   :  { %p241_p8 = por %p240_p7, %p239_p6 }
  0x14   :  { %p242_p9 = pnand %p241_p8, %p235_p5 }
  0x16   :  { %245 = shalt.err (!%p242_p9)
}
  0x17   :  { %32 = dma.hbm_to_vmem [thread:$0]  %s292_s1, 512, %s27_s17, [#allocation5], %s251_s12, %s251_s12, %s252_s13  }
  0x18   :  { %246 = dma.done.wait [#allocation3], 512  }
  0x19   :  { %247 = vsyncadd [#allocation3], 4294966784 }
  0x1a   :  { %248 = dma.done.wait [#allocation5], 512  }
  0x1b   :  { %249 = vsyncadd [#allocation5], 4294966784  ;;  %v41_v0 = vld [vmem:[#allocation2 + $0x10] sm:$0xff]  ;;  %v39_v1 = vld [vmem:[#allocation2] sm:$0xff]  ;;  %vm151_vm0 = vcmask 7168  }
  0x1c   :  { %51 = vmax.xlane.f32.xlu1 %v41_v0  ;;  %47 = vmax.xlane.f32.xlu0 %v39_v1  ;;  %v42_v2 = vld [vmem:[#allocation2 + $0x18] sm:$0xff]  ;;  %v40_v3 = vld [vmem:[#allocation2 + $0x8] sm:$0xff]  ;;  %v43_v5 = vld [vmem:[#allocation4] sm:$0xff] }
  0x1d   :  { %v44_v4 = vld [vmem:[#allocation4 + $0x8] sm:$0xff]  ;;  %v46_v6 = vld [vmem:[#allocation4 + $0x18] sm:$0xff]  ;;  %v45_v7 = vld [vmem:[#allocation4 + $0x10] sm:$0xff] }
  0x20   :  { %53 = vmax.xlane.f32.xlu1 %v42_v2  ;;  %49 = vmax.xlane.f32.xlu0 %v40_v3 }
  0x24   :  { %57 = vmax.xlane.f32.xlu1 %v44_v4  ;;  %55 = vmax.xlane.f32.xlu0 %v43_v5 }
  0x28   :  { %61 = vmax.xlane.f32.xlu1 %v46_v6  ;;  %59 = vmax.xlane.f32.xlu0 %v45_v7 }
  0xa5   :  { %v52_v8 = vpop.xlane.xlu1 %51  ;;  %v48_v9 = vpop.xlane.xlu0 %47 }
  0xa6   :  { %v65_v10 = vsub.f32 %v41_v0, %v52_v8  ;;  %v63_v11 = vsub.f32 %v39_v1, %v48_v9 }
  0xa8   :  { %v71_v12 = vmul.f32 1.442695, %v63_v11  ;;  %v75_v13 = vmul.f32 1.442695, %v65_v10 }
  0xa9   :  { %v54_v14 = vpop.xlane.xlu1 %53  ;;  %v50_v15 = vpop.xlane.xlu0 %49 }
  0xaa   :  { %v66_v16 = vsub.f32 %v42_v2, %v54_v14  ;;  %v64_v17 = vsub.f32 %v40_v3, %v50_v15  ;;  %166 = vpow2.f32 %v71_v12 }
  0xab   :  { %168 = vpow2.f32 %v75_v13 }
  0xac   :  { %v73_v18 = vmul.f32 1.442695, %v64_v17  ;;  %v77_v19 = vmul.f32 1.442695, %v66_v16 }
  0xad   :  { %v58_v20 = vpop.xlane.xlu1 %57  ;;  %v56_v21 = vpop.xlane.xlu0 %55 }
  0xae   :  { %v68_v22 = vsub.f32 %v44_v4, %v58_v20  ;;  %v67_v23 = vsub.f32 %v43_v5, %v56_v21  ;;  %170 = vpow2.f32 %v73_v18 }
  0xaf   :  { %172 = vpow2.f32 %v77_v19 }
  0xb0   :  { %v79_v24 = vmul.f32 1.442695, %v67_v23  ;;  %v81_v27 = vmul.f32 1.442695, %v68_v22  ;;  %v103_v39 = vsub.f32 %v67_v23, %v63_v11  ;;  %v104_v42 = vsub.f32 %v68_v22, %v64_v17 }
  0xb1   :  { %v62_v25 = vpop.xlane.xlu1 %61  ;;  %v60_v26 = vpop.xlane.xlu0 %59 }
  0xb2   :  { %v69_v28 = vsub.f32 %v45_v7, %v60_v26  ;;  %174 = vpow2.f32 %v79_v24  ;;  %v70_v29 = vsub.f32 %v46_v6, %v62_v25 }
  0xb3   :  { %176 = vpow2.f32 %v81_v27 }
  0xb4   :  { %v83_v30 = vmul.f32 1.442695, %v69_v28  ;;  %v85_v31 = vmul.f32 1.442695, %v70_v29  ;;  %v105_v43 = vsub.f32 %v69_v28, %v65_v10  ;;  %v106_v46 = vsub.f32 %v70_v29, %v66_v16 }
  0xb6   :  { %178 = vpow2.f32 %v83_v30 }
  0xb7   :  { %v167_v32 = vpop.eup %166  ;;  %180 = vpow2.f32 %v85_v31 }
  0xb8   :  { %87 = vadd.xlane.f32.xlu0 %v167_v32  ;;  %v169_v33 = vpop.eup %168 }
  0xbb   :  { %v171_v34 = vpop.eup %170 }
  0xbc   :  { %91 = vadd.xlane.f32.xlu0 %v169_v33  ;;  %89 = vadd.xlane.f32.xlu1 %v171_v34  ;;  %v173_v35 = vpop.eup %172 }
  0xbf   :  { %v175_v36 = vpop.eup %174 }
  0xc0   :  { %93 = vadd.xlane.f32.xlu1 %v173_v35  ;;  %95 = vadd.xlane.f32.xlu0 %v175_v36  ;;  %v177_v37 = vpop.eup %176  ;;  %v107_v40 = vmul.f32 %v175_v36, %v103_v39 }
  0xc1   :  { %v108_v44 = vmul.f32 %v177_v37, %v104_v42 }
  0xc3   :  { %v179_v38 = vpop.eup %178 }
  0xc4   :  { %97 = vadd.xlane.f32.xlu1 %v177_v37  ;;  %99 = vadd.xlane.f32.xlu0 %v179_v38  ;;  %v181_v41 = vpop.eup %180  ;;  %v109_v45 = vmul.f32 %v179_v38, %v105_v43 }
  0xc5   :  { %v110_v47 = vmul.f32 %v181_v41, %v106_v46 }
  0xc8   :  { %101 = vadd.xlane.f32.xlu1 %v181_v41  ;;  %111 = vadd.xlane.f32.xlu0 %v107_v40 }
  0xcc   :  { %113 = vadd.xlane.f32.xlu1 %v108_v44  ;;  %115 = vadd.xlane.f32.xlu0 %v109_v45 }
  0xd0   :  { %117 = vadd.xlane.f32.xlu1 %v110_v47 }
 0x141   :  { %v88_v48 = vpop.xlane.xlu0 %87 }
 0x142   :  { %182 = vlog2.f32 %v88_v48 }
 0x145   :  { %v90_v49 = vpop.xlane.xlu1 %89  ;;  %v92_v50 = vpop.xlane.xlu0 %91 }
 0x146   :  { %184 = vlog2.f32 %v90_v49 }
 0x147   :  { %186 = vlog2.f32 %v92_v50 }
 0x149   :  { %v94_v51 = vpop.xlane.xlu1 %93  ;;  %v96_v52 = vpop.xlane.xlu0 %95 }
 0x14a   :  { %188 = vrcp.f32 %v96_v52 }
 0x14b   :  { %190 = vlog2.f32 %v96_v52 }
 0x14c   :  { %192 = vlog2.f32 %v94_v51 }
 0x14d   :  { %v98_v53 = vpop.xlane.xlu1 %97  ;;  %v100_v54 = vpop.xlane.xlu0 %99 }
 0x14e   :  { %194 = vrcp.f32 %v98_v53 }
 0x14f   :  { %196 = vlog2.f32 %v98_v53  ;;  %v183_v56 = vpop.eup %182 }
 0x150   :  { %198 = vrcp.f32 %v100_v54  ;;  %v128_v62 = vmul.f32 0.6931472, %v183_v56 }
 0x151   :  { %200 = vlog2.f32 %v100_v54  ;;  %v102_v55 = vpop.xlane.xlu1 %101  ;;  %v112_v59 = vpop.xlane.xlu0 %111 }
 0x152   :  { %202 = vrcp.f32 %v102_v55 }
 0x153   :  { %204 = vlog2.f32 %v102_v55  ;;  %v185_v57 = vpop.eup %184 }
 0x154   :  { %v187_v58 = vpop.eup %186  ;;  %v130_v6 = vmul.f32 0.6931472, %v185_v57 }
 0x155   :  { %v114_v0 = vpop.xlane.xlu1 %113  ;;  %v116_v10 = vpop.xlane.xlu0 %115  ;;  %v132_v12 = vmul.f32 0.6931472, %v187_v58 }
 0x157   :  { %v189_v60 = vpop.eup %188 }
 0x158   :  { %v191_v61 = vpop.eup %190  ;;  %v120_v63 = vmul.f32 %v189_v60, %v112_v59 }
 0x159   :  { %v193_v1 = vpop.eup %192  ;;  %v140_v2 = vmul.f32 0.6931472, %v191_v61  ;;  %v118_v18 = vpop.xlane.xlu1 %117 }
 0x15a   :  { %v135_v4 = vadd.f32 %v128_v62, %v120_v63  ;;  %v134_v20 = vmul.f32 0.6931472, %v193_v1 }
 0x15b   :  { %v195_v3 = vpop.eup %194 }
 0x15c   :  { %v197_v5 = vpop.eup %196  ;;  %v122_v7 = vmul.f32 %v195_v3, %v114_v0  ;;  %v147_v9 = vsub.f32 %v135_v4, %v140_v2 }
 0x15d   :  { %v199_v8 = vpop.eup %198  ;;  %v142_v13 = vmul.f32 0.6931472, %v197_v5 }
 0x15e   :  { %v201_v11 = vpop.eup %200  ;;  %v136_v14 = vadd.f32 %v130_v6, %v122_v7  ;;  %v124_v15 = vmul.f32 %v199_v8, %v116_v10  ;;  %152 = vst.msk [vmem:[%s293_s2] sm:$0xff] %vm151_vm0, %v147_v9 }
 0x15f   :  { %v203_v16 = vpop.eup %202  ;;  %v144_v17 = vmul.f32 0.6931472, %v201_v11 }
 0x160   :  { %v205_v19 = vpop.eup %204  ;;  %v148_v21 = vsub.f32 %v136_v14, %v142_v13  ;;  %v137_v22 = vadd.f32 %v132_v12, %v124_v15  ;;  %v126_v23 = vmul.f32 %v203_v16, %v118_v18 }
 0x161   :  { %v146_v24 = vmul.f32 0.6931472, %v205_v19 }
 0x162   :  { %153 = vst.msk [vmem:[%s293_s2 + $0x8] sm:$0xff] %vm151_vm0, %v148_v21  ;;  %v149_v25 = vsub.f32 %v137_v22, %v144_v17  ;;  %v138_v26 = vadd.f32 %v134_v20, %v126_v23 }
 0x164   :  { %154 = vst.msk [vmem:[%s293_s2 + $0x10] sm:$0xff] %vm151_vm0, %v149_v25  ;;  %v150_v27 = vsub.f32 %v138_v26, %v146_v24 }
 0x166   :  { %155 = vst.msk [vmem:[%s293_s2 + $0x18] sm:$0xff] %vm151_vm0, %v150_v27 }
 0x167   :  { %160 = vsyncpa [#allocation3], 1 }
 0x168   :  { %161 = vsyncpa [#allocation5], 1 }

</bundles_post_ra>
